<compile_context>
chip_gen: v6e
topology: v6e:2x2x1
jax: 0.10.0
libtpu: 0.0.40
codegen_flags: <defaults>
</compile_context>

<pallas_src>
import functools

import numpy as np
import jax
import jax.numpy as jnp
from jax.experimental import pallas as pl
from jax.experimental.pallas import tpu as pltpu


TP = 128                       # row-tile for the max-pool patch kernel

# VMEM budget: worst-case matmul footprint here is ~16-20 MiB; keep the limit
# below v7x's 64 MiB physical VMEM on every generation.
_VMEM_LIMIT = 48 * 1024 * 1024
try:  # per-generation headroom when the runtime exposes it
    _cap = int(getattr(pltpu.get_tpu_info(), "vmem_capacity_bytes", 0) or 0)
    if _cap > 0:
        _VMEM_LIMIT = max(32 << 20, min(_cap * 3 // 4, 56 << 20))
except Exception:
    pass


# ---------------------------------------------------------------------------
# Pallas kernels
# ---------------------------------------------------------------------------
def _matmul_bias_kernel(a_ref, b_ref, bias_ref, o_ref, *, relu):
    # bf16 x bf16 -> f32 accumulation on the MXU, f32 epilogue, cast on store.
    acc = jnp.dot(a_ref[...], b_ref[...], preferred_element_type=jnp.float32)
    acc = acc + bias_ref[...]
    if relu:
        acc = jnp.maximum(acc, 0.0)
    o_ref[...] = acc.astype(o_ref.dtype)


def _pick_tm(m, k):
    """M-tile: aim for >=4 grid steps (keeps both v7x TensorCores busy on the
    small-spatial Mixed_6/7 stages), cap the bf16 A tile at ~4 MiB."""
    tm = 512
    while tm > 64 and tm * 4 > m:
        tm //= 2
    while tm > 64 and tm * k * 2 > (4 << 20):
        tm //= 2
    return tm


@functools.partial(jax.jit, static_argnames=("relu", "tm", "out_dtype"))
def _mm_call(a, b, bias, *, relu, tm, out_dtype):
    m, k = a.shape
    n = b.shape[1]
    kern = functools.partial(_matmul_bias_kernel, relu=relu)
    # TODO(synk): weight/bias blocks could be single-buffered (pl.Buffered(1))
    # and a K grid axis added for the largest-K convs; not needed at this
    # VMEM budget.
    return pl.pallas_call(
        kern,
        out_shape=jax.ShapeDtypeStruct((m, n), out_dtype),
        grid=(pl.cdiv(m, tm),),                      # ragged last block is fine
        in_specs=[
            pl.BlockSpec((tm, k), lambda i: (i, 0)),
            pl.BlockSpec((k, n), lambda i: (0, 0)),
            pl.BlockSpec((1, n), lambda i: (0, 0)),
        ],
        out_specs=pl.BlockSpec((tm, n), lambda i: (i, 0)),
        compiler_params=pltpu.CompilerParams(
            dimension_semantics=("parallel",),
            vmem_limit_bytes=_VMEM_LIMIT,
        ),
    )(a, b, bias)


def matmul_bias(a, b, bias, relu=False, out_dtype=jnp.bfloat16):
    """a:[M,K] @ b:[K,N] + bias:[1,N] (optionally ReLU) on the MXU (bf16 in,
    f32 accumulate, `out_dtype` out)."""
    m, k = a.shape
    tm = _pick_tm(m, k)
    return _mm_call(a.astype(jnp.bfloat16), b.astype(jnp.bfloat16),
                    bias.astype(jnp.float32), relu=relu, tm=tm,
                    out_dtype=out_dtype)


def _maxpool_kernel(p_ref, o_ref, *, kk):
    r = p_ref[:, 0, :]
    for k in range(1, kk):
        r = jnp.maximum(r, p_ref[:, k, :])
    o_ref[...] = r


@jax.jit
def _maxpool_patches(p):
    rows, kk, c = p.shape
    kern = functools.partial(_maxpool_kernel, kk=kk)
    return pl.pallas_call(
        kern,
        out_shape=jax.ShapeDtypeStruct((rows, c), p.dtype),
        grid=(pl.cdiv(rows, TP),),
        in_specs=[pl.BlockSpec((TP, kk, c), lambda i: (i, 0, 0))],
        out_specs=pl.BlockSpec((TP, c), lambda i: (i, 0)),
        compiler_params=pltpu.CompilerParams(
            dimension_semantics=("parallel",),
            vmem_limit_bytes=_VMEM_LIMIT,
        ),
    )(p)


def _avgpool3x3_s1_kernel(x_ref, o_ref):
    # x_ref: (1, H+2, 3, W, C) -- width taps pre-gathered (major dim), the 3
    # height taps are done here with major-dim ref slices (no relayout).
    h = o_ref.shape[1]
    acc = jnp.zeros(o_ref.shape, jnp.float32)
    for i in range(3):          # height taps
        for t in range(3):      # width taps
            acc = acc + x_ref[:, i:i + h, t, :, :].astype(jnp.float32)
    o_ref[...] = (acc * (1.0 / 9.0)).astype(o_ref.dtype)


@jax.jit
def avg_pool3x3_s1(x):
    """F.avg_pool2d(k=3, stride=1, padding=1), count_include_pad=True (/9)."""
    B, H, W, C = x.shape
    xp = jnp.pad(x, ((0, 0), (1, 1), (1, 1), (0, 0)))
    # TODO(synk): the width taps could also be folded in-kernel (sublane
    # shifts) to reach 1x input traffic; this keeps them as a 3x gather.
    xw = jnp.stack([xp[:, :, j:j + W, :] for j in range(3)], axis=2)
    return pl.pallas_call(
        _avgpool3x3_s1_kernel,
        out_shape=jax.ShapeDtypeStruct((B, H, W, C), x.dtype),
        grid=(B,),
        in_specs=[pl.BlockSpec((1, H + 2, 3, W, C),
                               lambda b: (b, 0, 0, 0, 0))],
        out_specs=pl.BlockSpec((1, H, W, C), lambda b: (b, 0, 0, 0)),
        compiler_params=pltpu.CompilerParams(
            dimension_semantics=("parallel",),
            vmem_limit_bytes=_VMEM_LIMIT,
        ),
    )(xw)


def _head_kernel(x_ref, w_ref, b_ref, o_ref):
    # x: (B, S, C) -> mean over S (8x8 global avg pool) -> Linear(C, nef).
    x = x_ref[...].astype(jnp.float32)
    pooled = jnp.sum(x, axis=1) * (1.0 / x.shape[1])
    o_ref[...] = (
        jnp.dot(pooled, w_ref[...], preferred_element_type=jnp.float32)
        + b_ref[...]
    )


@jax.jit
def avgpool_linear_head(x, w, b):
    """Fused F.avg_pool2d(k=8) + view + nn.Linear(2048, nef)."""
    B, S, C = x.shape
    N = w.shape[1]
    return pl.pallas_call(
        _head_kernel,
        out_shape=jax.ShapeDtypeStruct((B, N), jnp.float32),
        grid=(1,),
        in_specs=[
            pl.BlockSpec((B, S, C), lambda i: (0, 0, 0)),
            pl.BlockSpec((C, N), lambda i: (0, 0)),
            pl.BlockSpec((1, N), lambda i: (0, 0)),
        ],
        out_specs=pl.BlockSpec((B, N), lambda i: (0, 0)),
        compiler_params=pltpu.CompilerParams(vmem_limit_bytes=_VMEM_LIMIT),
    )(x, w, b)


# ---------------------------------------------------------------------------
# Plain-JAX glue: im2col patch extraction, conv / pool wrappers
# ---------------------------------------------------------------------------
def _pair(v):
    return (v, v) if isinstance(v, int) else v


def _extract_patches(x, kh, kw, sh, sw, ph, pw):
    if ph or pw:
        x = jnp.pad(x, ((0, 0), (ph, ph), (pw, pw), (0, 0)))
    B, H, W, C = x.shape
    ho = (H - kh) // sh + 1
    wo = (W - kw) // sw + 1
    pats = []
    for i in range(kh):
        for j in range(kw):
            pats.append(x[:, i:i + sh * ho:sh, j:j + sw * wo:sw, :])
    p = jnp.stack(pats, axis=3)          # (B, ho, wo, kh*kw, C)  (bf16)
    return p, ho, wo


def conv2d(x, w, bias, k, stride=1, padding=0, relu=False,
           out_dtype=jnp.bfloat16):
    """NHWC conv as (bf16) im2col + Pallas matmul.  w: [kh*kw*Cin, Cout]."""
    kh, kw = _pair(k)
    sh, sw = _pair(stride)
    ph, pw = _pair(padding)
    B, H, W, C = x.shape
    if kh == 1 and kw == 1 and sh == 1 and sw == 1 and ph == 0 and pw == 0:
        a = x.reshape(B * H * W, C)                  # free reshape, no patches
        ho, wo = H, W
    else:
        # TODO(synk): k>1 convs still materialize bf16 im2col patches in HBM
        # (kh*kw read blow-up, halved by bf16); a fully windowed conv kernel
        # would remove it entirely.
        p, ho, wo = _extract_patches(x, kh, kw, sh, sw, ph, pw)
        a = p.reshape(B * ho * wo, kh * kw * C)
    out = matmul_bias(a, w, bias, relu=relu, out_dtype=out_dtype)
    return out.reshape(B, ho, wo, w.shape[1])


def max_pool2d(x, k, stride):
    # Only two layers use this (73x73x64 and 35x35x192 outputs); bf16 patches.
    p, ho, wo = _extract_patches(x, k, k, stride, stride, 0, 0)
    B, C = x.shape[0], x.shape[-1]
    a = p.reshape(B * ho * wo, k * k, C)
    return _maxpool_patches(a).reshape(B, ho, wo, C)


# ---------------------------------------------------------------------------
# Deterministic synthetic parameters
# ---------------------------------------------------------------------------
class ParamGen:
    _BN_EPS = 1e-3

    def __init__(self, seed=0):
        self.rng = np.random.default_rng(seed)

    def uniform(self, shape, bound, dtype=jnp.float32):
        v = self.rng.uniform(-bound, bound, size=shape).astype(np.float32)
        return jnp.asarray(v, dtype=dtype)

    def basic_conv_params(self, cin, cout, k):
        """BasicConv2d = Conv(no bias) + BN(eps=1e-3, default init) + ReLU,
        with BN folded into the (bf16) matmul weight + (f32) bias."""
        kh, kw = _pair(k)
        fan_in = kh * kw * cin
        bound = float(np.sqrt(6.0 / fan_in))
        w = self.rng.uniform(-bound, bound, size=(fan_in, cout)).astype(np.float32)
        w = w * np.float32(1.0 / np.sqrt(1.0 + self._BN_EPS))
        bias = jnp.zeros((1, cout), jnp.float32)
        return jnp.asarray(w, dtype=jnp.bfloat16), bias


# ---------------------------------------------------------------------------
# CNNEncoder forward
# ---------------------------------------------------------------------------
def cnn_encoder_forward(x_nchw, nef, seed=0):
    P = ParamGen(seed)

    def bconv(x, cin, cout, k, stride=1, padding=0):
        w, b = P.basic_conv_params(cin, cout, k)
        return conv2d(x, w, b, k, stride=stride, padding=padding, relu=True)

    def bconv1x1_fused(x, cin, couts):
        # Fuse parallel 1x1 BasicConv2d branches sharing input x into a single
        # lane-dense matmul (x read once, N = sum(couts)); split afterwards.
        w, b = P.basic_conv_params(cin, int(sum(couts)), 1)
        y = conv2d(x, w, b, 1, relu=True)
        outs, off = [], 0
        for c in couts:
            outs.append(y[..., off:off + c])
            off += c
        return outs

    def inception_a(x, cin, pool_features):
        b1, b5, b3 = bconv1x1_fused(x, cin, (64, 48, 64))
        b5 = bconv(b5, 48, 64, 5, padding=2)
        b3 = bconv(b3, 64, 96, 3, padding=1)
        b3 = bconv(b3, 96, 96, 3, padding=1)
        bp = avg_pool3x3_s1(x)
        bp = bconv(bp, cin, pool_features, 1)
        return jnp.concatenate([b1, b5, b3, bp], axis=-1)

    def inception_b(x, cin):
        b3 = bconv(x, cin, 384, 3, stride=2)
        bd = bconv(x, cin, 64, 1)
        bd = bconv(bd, 64, 96, 3, padding=1)
        bd = bconv(bd, 96, 96, 3, stride=2)
        bp = max_pool2d(x, 3, 2)
        return jnp.concatenate([b3, bd, bp], axis=-1)

    def inception_c(x, cin, c7):
        b1, b7, bd = bconv1x1_fused(x, cin, (192, c7, c7))
        b7 = bconv(b7, c7, c7, (1, 7), padding=(0, 3))
        b7 = bconv(b7, c7, 192, (7, 1), padding=(3, 0))
        bd = bconv(bd, c7, c7, (7, 1), padding=(3, 0))
        bd = bconv(bd, c7, c7, (1, 7), padding=(0, 3))
        bd = bconv(bd, c7, c7, (7, 1), padding=(3, 0))
        bd = bconv(bd, c7, 192, (1, 7), padding=(0, 3))
        bp = avg_pool3x3_s1(x)
        bp = bconv(bp, cin, 192, 1)
        return jnp.concatenate([b1, b7, bd, bp], axis=-1)

    def inception_d(x, cin):
        b3, b7 = bconv1x1_fused(x, cin, (192, 192))
        b3 = bconv(b3, 192, 320, 3, stride=2)
        b7 = bconv(b7, 192, 192, (1, 7), padding=(0, 3))
        b7 = bconv(b7, 192, 192, (7, 1), padding=(3, 0))
        b7 = bconv(b7, 192, 192, 3, stride=2)
        bp = max_pool2d(x, 3, 2)
        return jnp.concatenate([b3, b7, bp], axis=-1)

    def inception_e(x, cin):
        b1, b3, bd = bconv1x1_fused(x, cin, (320, 384, 448))
        b3a = bconv(b3, 384, 384, (1, 3), padding=(0, 1))
        b3b = bconv(b3, 384, 384, (3, 1), padding=(1, 0))
        b3 = jnp.concatenate([b3a, b3b], axis=-1)
        bd = bconv(bd, 448, 384, 3, padding=1)
        bda = bconv(bd, 384, 384, (1, 3), padding=(0, 1))
        bdb = bconv(bd, 384, 384, (3, 1), padding=(1, 0))
        bd = jnp.concatenate([bda, bdb], axis=-1)
        bp = avg_pool3x3_s1(x)
        bp = bconv(bp, cin, 192, 1)
        return jnp.concatenate([b1, b3, bd, bp], axis=-1)

    B = x_nchw.shape[0]
    x = jnp.transpose(x_nchw, (0, 2, 3, 1)).astype(jnp.float32)   # NHWC
    # nn.Upsample(size=(299,299), mode='bilinear', align_corners=False)
    # TODO(synk): bilinear resize kept in plain JAX (gather+lerp glue).
    x = jax.image.resize(x, (B, 299, 299, x.shape[-1]), method="bilinear")
    x = x.astype(jnp.bfloat16)               # backbone activations in bf16

    x = bconv(x, 3, 32, 3, stride=2)        # Conv2d_1a_3x3 -> 149x149x32
    x = bconv(x, 32, 32, 3)                 # Conv2d_2a_3x3 -> 147x147x32
    x = bconv(x, 32, 64, 3, padding=1)      # Conv2d_2b_3x3 -> 147x147x64
    x = max_pool2d(x, 3, 2)                 # -> 73x73x64
    x = bconv(x, 64, 80, 1)                 # Conv2d_3b_1x1 -> 73x73x80
    x = bconv(x, 80, 192, 3)                # Conv2d_4a_3x3 -> 71x71x192
    x = max_pool2d(x, 3, 2)                 # -> 35x35x192

    x = inception_a(x, 192, 32)             # Mixed_5b -> 35x35x256
    x = inception_a(x, 256, 64)             # Mixed_5c -> 35x35x288
    x = inception_a(x, 288, 64)             # Mixed_5d -> 35x35x288
    x = inception_b(x, 288)                 # Mixed_6a -> 17x17x768
    x = inception_c(x, 768, 128)            # Mixed_6b
    x = inception_c(x, 768, 160)            # Mixed_6c
    x = inception_c(x, 768, 160)            # Mixed_6d
    x = inception_c(x, 768, 192)            # Mixed_6e
    features = x                            # (B, 17, 17, 768)
    x = inception_d(x, 768)                 # Mixed_7a -> 8x8x1280
    x = inception_e(x, 1280)                # Mixed_7b -> 8x8x2048
    x = inception_e(x, 2048)                # Mixed_7c -> 8x8x2048

    # emb_cnn_code: avg_pool2d(k=8) + view + Linear(2048, nef)  (fused kernel)
    w_code = P.uniform((2048, nef), 0.1)                        # init_trainable
    b_code = P.uniform((1, nef), float(1.0 / np.sqrt(2048.0)))  # Linear default
    cnn_code = avgpool_linear_head(x.reshape(B, 8 * 8, 2048), w_code, b_code)

    # emb_features: Conv2d(768, nef, kernel_size=1, bias=False) on 17x17 map
    w_feat = P.uniform((768, nef), 0.1)
    zeros = jnp.zeros((1, nef), jnp.float32)
    feat = matmul_bias(features.reshape(B * 17 * 17, 768), w_feat, zeros,
                       relu=False, out_dtype=jnp.float32)
    feat = feat.reshape(B, 17, 17, nef)
    features_nchw = jnp.transpose(feat, (0, 3, 1, 2))    # back to NCHW

    return features_nchw, cnn_code


if __name__ == "__main__":
    nef = 32
    key = jax.random.PRNGKey(0)
    x = jax.random.uniform(key, (2, 3, 16, 16), dtype=jnp.float32)

    features, cnn_code = cnn_encoder_forward(x, nef)
    features = jax.block_until_ready(features)
    cnn_code = jax.block_until_ready(cnn_code)

    assert features.shape == (2, nef, 17, 17), features.shape
    assert cnn_code.shape == (2, nef), cnn_code.shape
    assert bool(jnp.isfinite(features).all()), "non-finite features"
    assert bool(jnp.isfinite(cnn_code).all()), "non-finite cnn_code"
    print("KERNEL_OK")
</pallas_src>

<mosaic_0001>
module attributes {stable_mosaic.version = 11 : i64} {
  func.func @_matmul_bias_kernel(%arg0: i32, %arg1: memref<512x27xbf16, #tpu.memory_space<vmem>>, %arg2: memref<27x32xbf16, #tpu.memory_space<vmem>>, %arg3: memref<1x32xf32, #tpu.memory_space<vmem>>, %arg4: memref<512x32xbf16, #tpu.memory_space<vmem>>) attributes {dimension_semantics = [#tpu.dimension_semantics<parallel>], iteration_bounds = array<i64: 87>, scalar_prefetch = 0 : i64, scratch_operands = 0 : i64, tpu.core_type = #tpu.core_type<tc>, window_params = [{transform_indices = @transform_0, window_bounds = array<i64: 512, 27>}, {pipeline_mode = #tpu.pipeline_mode<synchronous>, transform_indices = @transform_1, window_bounds = array<i64: 27, 32>}, {pipeline_mode = #tpu.pipeline_mode<synchronous>, transform_indices = @transform_2, window_bounds = array<i64: 1, 32>}, {transform_indices = @transform_3, window_bounds = array<i64: 512, 32>}]} {
    %c0 = arith.constant 0 : index
    %c0_0 = arith.constant 0 : index
    %0 = vector.load %arg1[%c0, %c0_0] : memref<512x27xbf16, #tpu.memory_space<vmem>>, vector<512x27xbf16>
    %c0_1 = arith.constant 0 : index
    %c0_2 = arith.constant 0 : index
    %1 = vector.load %arg2[%c0_1, %c0_2] : memref<27x32xbf16, #tpu.memory_space<vmem>>, vector<27x32xbf16>
    %cst = arith.constant dense<0.000000e+00> : vector<512x32xf32>
    %2 = tpu.matmul %0, %1, %cst {dimension_numbers = #tpu.dot_dimension_numbers<[1], [0], [0], [1], [0, 0, 1, 1], [], []>} : vector<512x27xbf16>, vector<27x32xbf16>, vector<512x32xf32> -> vector<512x32xf32>
    %c0_3 = arith.constant 0 : index
    %c0_4 = arith.constant 0 : index
    %3 = vector.load %arg3[%c0_3, %c0_4] : memref<1x32xf32, #tpu.memory_space<vmem>>, vector<1x32xf32>
    %4 = vector.broadcast %3 : vector<1x32xf32> to vector<512x32xf32>
    %5 = arith.addf %2, %4 : vector<512x32xf32>
    %cst_5 = arith.constant 0.000000e+00 : f32
    %6 = vector.broadcast %cst_5 : f32 to vector<512x32xf32>
    %7 = arith.maximumf %5, %6 : vector<512x32xf32>
    %8 = arith.truncf %7 : vector<512x32xf32> to vector<512x32xbf16>
    %c0_6 = arith.constant 0 : index
    %c0_7 = arith.constant 0 : index
    %9 = vector.load %arg4[%c0_6, %c0_7] : memref<512x32xbf16, #tpu.memory_space<vmem>>, vector<512x32xbf16>
    tpu.vector_store %arg4[%c0_6, %c0_7], %8 {strides = array<i32>} : memref<512x32xbf16, #tpu.memory_space<vmem>>, vector<512x32xbf16>,
    return
  }
  func.func @transform_0(%arg0: i32) -> (i32, i32) {
    %c0_i32 = arith.constant 0 : i32
    %c0_i32_0 = arith.constant 0 : i32
    return %arg0, %c0_i32 : i32, i32
  }
  func.func @transform_1(%arg0: i32) -> (i32, i32) {
    %c0_i32 = arith.constant 0 : i32
    %c0_i32_0 = arith.constant 0 : i32
    %c0_i32_1 = arith.constant 0 : i32
    return %c0_i32, %c0_i32_0 : i32, i32
  }
  func.func @transform_2(%arg0: i32) -> (i32, i32) {
    %c0_i32 = arith.constant 0 : i32
    %c0_i32_0 = arith.constant 0 : i32
    %c0_i32_1 = arith.constant 0 : i32
    return %c0_i32, %c0_i32_0 : i32, i32
  }
  func.func @transform_3(%arg0: i32) -> (i32, i32) {
    %c0_i32 = arith.constant 0 : i32
    %c0_i32_0 = arith.constant 0 : i32
    return %arg0, %c0_i32 : i32, i32
  }
}

</mosaic_0001>

<bundles_post_ra>
// kernel: _mm_call.1
= control target key start
LH: loop header
LB: loop body
LE: loop exit
PB: predicated region body
PF: predicated region fallthrough
CT: control target
= control target key end

     0   :  { %s2245_s12 = smov 0   ;;  %s2247_s13 = smov 0   ;;  %s2753_s0 = inlined_call_operand.vmem [shape: bf16[44402,27], index: 0, kind: input, shape index: {}]   ;;  %s2754_s1 = inlined_call_operand.vmem [shape: bf16[27,32], index: 1, kind: input, shape index: {}]   ;;  %s2755_s2 = inlined_call_operand.vmem [shape: f32[1,32], index: 2, kind: input, shape index: {}]   ;;  %s2756_s3 = inlined_call_operand.vmem [shape: bf16[44402,32], index: 3, kind: output, shape index: {}]  }
   0x1   :  { %s2249_s14 = smov 0  }
   0x2 LB: > { %s2258_s15 = sadd.s32 4294967295, %s2190_s14   ;;  %s2260_s16 = sadd.s32 1, %s2190_s14   ;;  %s2190_s14 = sphi %s2249_s14, %s2763_s14   ;;  %s2186_s13 = sphi %s2247_s13, %s2762_s13   ;;  %s2182_s12 = sphi %s2245_s12, %s2761_s12  }
   0x3   : > { %s85_s17 = ssub.s32 %s2190_s14, %s2260_s16  ;;  %s88_s18 = sadd.s32 1, %s2186_s13 }
   0x4   : > { %p86_p0 = scmp.eq.s32.totalorder %s85_s17, 0  ;;  %p98_p1 = scmp.ne.s32.totalorder %s2186_s13, %s2182_s12 }
   0x5   : > { %p99_p2 = scmp.eq.s32.totalorder %s2258_s15, 86  ;;  %p1688_p3 = scmp.ge.s32.totalorder %s2190_s14, 1 }
   0x6   : > { %s2268_s19 = scalar_select %p86_p0, %s2186_s13, %s88_s18  }
   0x7   : > { %p2270_p4 = por %p99_p2, %p98_p1  ;;  %p146_p5 = scmp.lt.s32.totalorder %s2190_s14, 88 }
   0x9   : > { %p147_p6 = pnand %p1688_p3, %p146_p5 }
   0xa   : > { %s2278_s23 = sshll.u32 (!%p147_p6), %s2258_s15, 6  ;;  %s170_s4 = sand.u32 (!%p147_p6), 1, %s2182_s12  }
   0xb   : > { %150 = sbr.rel (%p147_p6) target bundleno = 372 (0x174), region = 32  ;;  %p178_p7 = scmp.lt.s32.totalorder (!%p147_p6), %s2278_s23, 5550 }
   0xc   : > { %s1689_s7 = sshll.u32 (!%p147_p6), %s170_s4, 8 }
   0xd   : > { %s2366_s8 = scalar_lea.vmem (!%p147_p6), [#allocation2], %s1689_s7  }
  0x10   : > { %v2102_v0 = vld [vmem:[%s2754_s1 + $0x8] sm:$0x3f]   ;;  %vm536_vm0 = vcmask 1044480   ;;  %vm537_vm1 = vcmask 1045504   ;;  %v2224_v1 = vmov 65535   ;;  %v2103_v5 = vld [vmem:[%s2754_s1] sm:$0xff]  }
  0x11   : > { %v538_v2 = vsel %vm536_vm0, 4294967295, %v2224_v1  ;;  %s179_s26 = scalar_select %p178_p7, %s2278_s23, 5550  ;;  %vm439_vm2 = vcmask 220160   ;;  %v2358_v38 = vld [vmem:[%s2755_s2] ss:$0 sm:$0xff]  ;;  %vm1152_vm3 = vcmask 257024  }
  0x12   : > { %v539_v3 = vsel %vm537_vm1, %v538_v2, 0  ;;  %s1225_s9 = ssub.s32 (%p2270_p4), 5551, %s2278_s23  ;;  %s1904_s10 = sshll.u32 (%p2270_p4), %s2258_s15, 8 }
  0x13   : > { %v541_v4 = vand.u32 %v2102_v0, %v539_v3  ;;  %s1691_s27 = sshll.u32 %s179_s26, 2  ;;  %p1226_p8 = scmp.lt.s32.totalorder (%p2270_p4), %s1225_s9, 64 }
  0x14   : > { %s2288_s30 = scalar_lea.vmem %s2753_s0, %s1691_s27  ;;  %s2561_s14 = scalar_lea.vmem (%p2270_p4), %s2756_s3, %s1904_s10  }
  0x15   : > { %1941 = vmatprep.subr.bf16.mxu0 %v541_v4  ;;  %2009 = vmatprep.subr.bf16.mxu1 %v541_v4  ;;  %v2104_v6 = vld [vmem:[%s2288_s30] sm:$0xff]   ;;  %v2106_v8 = vld [vmem:[%s2288_s30 + $0x8] sm:$0xff]   ;;  %v2108_v10 = vld [vmem:[%s2288_s30 + $0x10] sm:$0xff]  }
  0x16   : > { %1942 = vmatpush3.bf16.msra.mxu0 %v541_v4  ;;  %2011 = vmatpush3.bf16.msra.mxu1 %v541_v4  ;;  %v2105_v7 = vld [vmem:[%s2288_s30 + $0x80] sm:$0xff]   ;;  %v2107_v9 = vld [vmem:[%s2288_s30 + $0x88] sm:$0xff]   ;;  %v2109_v11 = vld [vmem:[%s2288_s30 + $0x90] sm:$0xff]  }
  0x17   : > { %1943 = vmatprep.subr.bf16.mxu0 %v2103_v5  ;;  %2010 = vmatprep.subr.bf16.mxu1 %v2103_v5  ;;  %v2110_v12 = vld [vmem:[%s2288_s30 + $0x18] sm:$0xff]   ;;  %v2112_v14 = vld [vmem:[%s2288_s30 + $0x20] sm:$0xff]   ;;  %v2114_v16 = vld [vmem:[%s2288_s30 + $0x28] sm:$0xff]  }
  0x18   : > { %1945 = vmatprep.mubr.msk.bf16.mxu0 %vm439_vm2, %v2104_v6  ;;  %1977 = vmatprep.mubr.msk.bf16.mxu1 %vm439_vm2, %v2105_v7  ;;  %v2111_v13 = vld [vmem:[%s2288_s30 + $0x98] sm:$0xff]   ;;  %v2113_v15 = vld [vmem:[%s2288_s30 + $0xa0] sm:$0xff]   ;;  %v2115_v17 = vld [vmem:[%s2288_s30 + $0xa8] sm:$0xff]  }
  0x19   : > { %v2116_v18 = vld [vmem:[%s2288_s30 + $0x30] sm:$0xff]   ;;  %v2118_v20 = vld [vmem:[%s2288_s30 + $0x38] sm:$0xff]   ;;  %v2120_v22 = vld [vmem:[%s2288_s30 + $0x40] sm:$0xff]  }
  0x1a   : > { %1944 = vmatpush3.bf16.msra.mxu0 %v2103_v5  ;;  %2012 = vmatpush3.bf16.msra.mxu1 %v2103_v5  ;;  %v2117_v19 = vld [vmem:[%s2288_s30 + $0xb0] sm:$0xff]   ;;  %v2119_v21 = vld [vmem:[%s2288_s30 + $0xb8] sm:$0xff]   ;;  %v2121_v23 = vld [vmem:[%s2288_s30 + $0xc0] sm:$0xff]  }
  0x1b   : > { %v2122_v24 = vld [vmem:[%s2288_s30 + $0x48] sm:$0xff]   ;;  %v2124_v26 = vld [vmem:[%s2288_s30 + $0x50] sm:$0xff]   ;;  %v2126_v28 = vld [vmem:[%s2288_s30 + $0x58] sm:$0xff]  }
  0x1c   : > { %v2123_v25 = vld [vmem:[%s2288_s30 + $0xc8] sm:$0xff]   ;;  %v2125_v27 = vld [vmem:[%s2288_s30 + $0xd0] sm:$0xff]   ;;  %v2127_v29 = vld [vmem:[%s2288_s30 + $0xd8] sm:$0xff]  }
  0x1d   : > { %1946 = vmatmul.mubr.msk.bf16.vlgmr.msra.gmra.mxu0 %vm439_vm2, %v2106_v8  ;;  %1978 = vmatmul.mubr.msk.bf16.vlgmr.msra.gmra.mxu1 %vm439_vm2, %v2107_v9  ;;  %v2128_v30 = vld [vmem:[%s2288_s30 + $0x60] sm:$0xff]   ;;  %v2130_v32 = vld [vmem:[%s2288_s30 + $0x68] sm:$0xff]   ;;  %v2132_v34 = vld [vmem:[%s2288_s30 + $0x70] sm:$0xff]  }
  0x1e   : > { %1949 = vmatprep.mubr.msk.bf16.mxu0 %vm439_vm2, %v2108_v10  ;;  %1981 = vmatprep.mubr.msk.bf16.mxu1 %vm439_vm2, %v2109_v11  ;;  %v2129_v31 = vld [vmem:[%s2288_s30 + $0xe0] sm:$0xff]   ;;  %v2131_v33 = vld [vmem:[%s2288_s30 + $0xe8] sm:$0xff]   ;;  %v2133_v35 = vld [vmem:[%s2288_s30 + $0xf0] sm:$0xff]  }
  0x1f   : > { %v2134_v36 = vld [vmem:[%s2288_s30 + $0x78] sm:$0xff]  }
  0x20   : > { %v2135_v37 = vld [vmem:[%s2288_s30 + $0xf8] sm:$0xff]  }
  0x25   : > { %1950 = vmatmul.mubr.msk.bf16.gmra.mxu0 %vm439_vm2, %v2110_v12  ;;  %1982 = vmatmul.mubr.msk.bf16.gmra.mxu1 %vm439_vm2, %v2111_v13 }
  0x26   : > { %1953 = vmatprep.mubr.msk.bf16.mxu0 %vm439_vm2, %v2112_v14  ;;  %1985 = vmatprep.mubr.msk.bf16.mxu1 %vm439_vm2, %v2113_v15 }
  0x2d   : > { %1954 = vmatmul.mubr.msk.bf16.gmra.mxu0 %vm439_vm2, %v2114_v16  ;;  %1986 = vmatmul.mubr.msk.bf16.gmra.mxu1 %vm439_vm2, %v2115_v17 }
  0x2e   : > { %1957 = vmatprep.mubr.msk.bf16.mxu0 %vm439_vm2, %v2116_v18  ;;  %1989 = vmatprep.mubr.msk.bf16.mxu1 %vm439_vm2, %v2117_v19 }
  0x35   : > { %1958 = vmatmul.mubr.msk.bf16.gmra.mxu0 %vm439_vm2, %v2118_v20  ;;  %1990 = vmatmul.mubr.msk.bf16.gmra.mxu1 %vm439_vm2, %v2119_v21 }
  0x36   : > { %1961 = vmatprep.mubr.msk.bf16.mxu0 %vm439_vm2, %v2120_v22  ;;  %1993 = vmatprep.mubr.msk.bf16.mxu1 %vm439_vm2, %v2121_v23 }
  0x3d   : > { %1962 = vmatmul.mubr.msk.bf16.gmra.mxu0 %vm439_vm2, %v2122_v24  ;;  %1994 = vmatmul.mubr.msk.bf16.gmra.mxu1 %vm439_vm2, %v2123_v25 }
  0x3e   : > { %1965 = vmatprep.mubr.msk.bf16.mxu0 %vm439_vm2, %v2124_v26  ;;  %1997 = vmatprep.mubr.msk.bf16.mxu1 %vm439_vm2, %v2125_v27 }
  0x45   : > { %1966 = vmatmul.mubr.msk.bf16.gmra.mxu0 %vm439_vm2, %v2126_v28  ;;  %1998 = vmatmul.mubr.msk.bf16.gmra.mxu1 %vm439_vm2, %v2127_v29 }
  0x46   : > { %1969 = vmatprep.mubr.msk.bf16.mxu0 %vm439_vm2, %v2128_v30  ;;  %2001 = vmatprep.mubr.msk.bf16.mxu1 %vm439_vm2, %v2129_v31 }
  0x4d   : > { %1970 = vmatmul.mubr.msk.bf16.gmra.mxu0 %vm439_vm2, %v2130_v32  ;;  %2002 = vmatmul.mubr.msk.bf16.gmra.mxu1 %vm439_vm2, %v2131_v33 }
  0x4e   : > { %1973 = vmatprep.mubr.msk.bf16.mxu0 %vm439_vm2, %v2132_v34  ;;  %2005 = vmatprep.mubr.msk.bf16.mxu1 %vm439_vm2, %v2133_v35 }
  0x55   : > { %1974 = vmatmul.mubr.msk.bf16.gmra.mxu0 %vm439_vm2, %v2134_v36  ;;  %2006 = vmatmul.mubr.msk.bf16.gmra.mxu1 %vm439_vm2, %v2135_v37 }
  0xdd   : > { %v1947_v39 = vpop.f32.mrf.mxu0  ;;  %v1979_v40 = vpop.f32.mrf.mxu1 }
  0xde   : > { %v586_v41 = vadd.f32 %v1947_v39, %v2358_v38  ;;  %v714_v42 = vadd.f32 %v1979_v40, %v2358_v38 }
  0xdf   : > { %v577_v43 = vpop.f32.mrf.mxu0  ;;  %v705_v44 = vpop.f32.mrf.mxu1 }
  0xe0   : > { %v834_v45 = vmax.f32 %v586_v41, 0.0  ;;  %v866_v46 = vmax.f32 %v714_v42, 0.0  ;;  %v578_v47 = vadd.f32 %v2358_v38, %v577_v43  ;;  %v706_v48 = vadd.f32 %v2358_v38, %v705_v44 }
  0xe1   : > { %v1948_v49 = vpop.f32.mrf.mxu0  ;;  %v1980_v50 = vpop.f32.mrf.mxu1 }
  0xe2   : > { %v1842_v51 = vpack.c.bf16 %v834_v45, %v834_v45  ;;  %v1874_v52 = vpack.c.bf16 %v866_v46, %v866_v46  ;;  %v832_v53 = vmax.f32 %v578_v47, 0.0  ;;  %v864_v54 = vmax.f32 %v706_v48, 0.0 }
  0xe3   : > { %v589_v55 = vadd.f32 %v1948_v49, %v2358_v38  ;;  %v717_v56 = vadd.f32 %v1980_v50, %v2358_v38  ;;  %v580_v57 = vpop.f32.mrf.mxu0  ;;  %v708_v58 = vpop.f32.mrf.mxu1 }
  0xe4   : > { %1155 = vst.msk [vmem:[%s2366_s8 + $0x8] sm:$0xf] %vm1152_vm3, %v1842_v51  ;;  %1187 = vst.msk [vmem:[%s2366_s8 + $0x88] sm:$0xf] %vm1152_vm3, %v1874_v52  ;;  %v1840_v59 = vpack.c.bf16 %v832_v53, %v832_v53  ;;  %v1872_v60 = vpack.c.bf16 %v864_v54, %v864_v54  ;;  %v581_v61 = vadd.f32 %v2358_v38, %v580_v57 }
  0xe5   : > { %v709_v62 = vadd.f32 %v2358_v38, %v708_v58  ;;  %v835_v63 = vmax.f32 %v589_v55, 0.0  ;;  %v867_v0 = vmax.f32 %v717_v56, 0.0  ;;  %v1951_v1 = vpop.f32.mrf.mxu0  ;;  %v1983_v2 = vpop.f32.mrf.mxu1 }
  0xe6   : > { %1153 = vst.msk [vmem:[%s2366_s8] sm:$0xf] %vm1152_vm3, %v1840_v59  ;;  %1185 = vst.msk [vmem:[%s2366_s8 + $0x80] sm:$0xf] %vm1152_vm3, %v1872_v60  ;;  %v833_v3 = vmax.f32 %v581_v61, 0.0  ;;  %v602_v5 = vadd.f32 %v1951_v1, %v2358_v38  ;;  %v730_v6 = vadd.f32 %v1983_v2, %v2358_v38 }
  0xe7   : > { %v865_v4 = vmax.f32 %v709_v62, 0.0  ;;  %v1843_v7 = vpack.c.bf16 %v835_v63, %v835_v63  ;;  %v1875_v8 = vpack.c.bf16 %v867_v0, %v867_v0  ;;  %v593_v9 = vpop.f32.mrf.mxu0  ;;  %v721_v10 = vpop.f32.mrf.mxu1 }
  0xe8   : > { %v1841_v11 = vpack.c.bf16 %v833_v3, %v833_v3  ;;  %v838_v13 = vmax.f32 %v602_v5, 0.0  ;;  %v870_v14 = vmax.f32 %v730_v6, 0.0  ;;  %v594_v15 = vadd.f32 %v2358_v38, %v593_v9 }
  0xe9   : > { %v1873_v12 = vpack.c.bf16 %v865_v4, %v865_v4  ;;  %1156 = vst.msk [vmem:[%s2366_s8 + $0xc] sm:$0xf] %vm1152_vm3, %v1843_v7  ;;  %1188 = vst.msk [vmem:[%s2366_s8 + $0x8c] sm:$0xf] %vm1152_vm3, %v1875_v8  ;;  %v722_v16 = vadd.f32 %v2358_v38, %v721_v10  ;;  %v1952_v17 = vpop.f32.mrf.mxu0  ;;  %v1984_v18 = vpop.f32.mrf.mxu1 }
  0xea   : > { %1154 = vst.msk [vmem:[%s2366_s8 + $0x4] sm:$0xf] %vm1152_vm3, %v1841_v11  ;;  %v1846_v19 = vpack.c.bf16 %v838_v13, %v838_v13  ;;  %v1878_v20 = vpack.c.bf16 %v870_v14, %v870_v14  ;;  %v605_v21 = vadd.f32 %v1952_v17, %v2358_v38  ;;  %v733_v22 = vadd.f32 %v1984_v18, %v2358_v38 }
  0xeb   : > { %1186 = vst.msk [vmem:[%s2366_s8 + $0x84] sm:$0xf] %vm1152_vm3, %v1873_v12  ;;  %v836_v23 = vmax.f32 %v594_v15, 0.0  ;;  %v868_v24 = vmax.f32 %v722_v16, 0.0  ;;  %v596_v25 = vpop.f32.mrf.mxu0  ;;  %v724_v26 = vpop.f32.mrf.mxu1 }
  0xec   : > { %1159 = vst.msk [vmem:[%s2366_s8 + $0x18] sm:$0xf] %vm1152_vm3, %v1846_v19  ;;  %1191 = vst.msk [vmem:[%s2366_s8 + $0x98] sm:$0xf] %vm1152_vm3, %v1878_v20  ;;  %v839_v27 = vmax.f32 %v605_v21, 0.0  ;;  %v871_v28 = vmax.f32 %v733_v22, 0.0  ;;  %v597_v29 = vadd.f32 %v2358_v38, %v596_v25  ;;  %v725_v30 = vadd.f32 %v2358_v38, %v724_v26 }
  0xed   : > { %v1844_v31 = vpack.c.bf16 %v836_v23, %v836_v23  ;;  %v1876_v32 = vpack.c.bf16 %v868_v24, %v868_v24  ;;  %v1955_v33 = vpop.f32.mrf.mxu0  ;;  %v1987_v34 = vpop.f32.mrf.mxu1 }
  0xee   : > { %v1847_v35 = vpack.c.bf16 %v839_v27, %v839_v27  ;;  %v1879_v36 = vpack.c.bf16 %v871_v28, %v871_v28  ;;  %v837_v37 = vmax.f32 %v597_v29, 0.0  ;;  %v869_v39 = vmax.f32 %v725_v30, 0.0 }
  0xef   : > { %1157 = vst.msk [vmem:[%s2366_s8 + $0x10] sm:$0xf] %vm1152_vm3, %v1844_v31  ;;  %1189 = vst.msk [vmem:[%s2366_s8 + $0x90] sm:$0xf] %vm1152_vm3, %v1876_v32  ;;  %v618_v40 = vadd.f32 %v1955_v33, %v2358_v38  ;;  %v746_v41 = vadd.f32 %v1987_v34, %v2358_v38  ;;  %v609_v42 = vpop.f32.mrf.mxu0  ;;  %v737_v43 = vpop.f32.mrf.mxu1 }
  0xf0   : > { %1160 = vst.msk [vmem:[%s2366_s8 + $0x1c] sm:$0xf] %vm1152_vm3, %v1847_v35  ;;  %1192 = vst.msk [vmem:[%s2366_s8 + $0x9c] sm:$0xf] %vm1152_vm3, %v1879_v36  ;;  %v1845_v44 = vpack.c.bf16 %v837_v37, %v837_v37  ;;  %v1877_v45 = vpack.c.bf16 %v869_v39, %v869_v39  ;;  %v610_v46 = vadd.f32 %v2358_v38, %v609_v42 }
  0xf1   : > { %v738_v47 = vadd.f32 %v2358_v38, %v737_v43  ;;  %v842_v48 = vmax.f32 %v618_v40, 0.0  ;;  %v874_v49 = vmax.f32 %v746_v41, 0.0  ;;  %v1956_v50 = vpop.f32.mrf.mxu0  ;;  %v1988_v51 = vpop.f32.mrf.mxu1 }
  0xf2   : > { %1158 = vst.msk [vmem:[%s2366_s8 + $0x14] sm:$0xf] %vm1152_vm3, %v1845_v44  ;;  %1190 = vst.msk [vmem:[%s2366_s8 + $0x94] sm:$0xf] %vm1152_vm3, %v1877_v45  ;;  %v840_v52 = vmax.f32 %v610_v46, 0.0  ;;  %v621_v54 = vadd.f32 %v1956_v50, %v2358_v38  ;;  %v749_v55 = vadd.f32 %v1988_v51, %v2358_v38 }
  0xf3   : > { %v872_v53 = vmax.f32 %v738_v47, 0.0  ;;  %v1850_v56 = vpack.c.bf16 %v842_v48, %v842_v48  ;;  %v1882_v57 = vpack.c.bf16 %v874_v49, %v874_v49  ;;  %v612_v58 = vpop.f32.mrf.mxu0  ;;  %v740_v59 = vpop.f32.mrf.mxu1 }
  0xf4   : > { %v1848_v60 = vpack.c.bf16 %v840_v52, %v840_v52  ;;  %v843_v62 = vmax.f32 %v621_v54, 0.0  ;;  %v875_v63 = vmax.f32 %v749_v55, 0.0  ;;  %v613_v0 = vadd.f32 %v2358_v38, %v612_v58 }
  0xf5   : > { %v1880_v61 = vpack.c.bf16 %v872_v53, %v872_v53  ;;  %1163 = vst.msk [vmem:[%s2366_s8 + $0x28] sm:$0xf] %vm1152_vm3, %v1850_v56  ;;  %1195 = vst.msk [vmem:[%s2366_s8 + $0xa8] sm:$0xf] %vm1152_vm3, %v1882_v57  ;;  %v741_v1 = vadd.f32 %v2358_v38, %v740_v59  ;;  %v1959_v2 = vpop.f32.mrf.mxu0  ;;  %v1991_v3 = vpop.f32.mrf.mxu1 }
  0xf6   : > { %1161 = vst.msk [vmem:[%s2366_s8 + $0x20] sm:$0xf] %vm1152_vm3, %v1848_v60  ;;  %v1851_v4 = vpack.c.bf16 %v843_v62, %v843_v62  ;;  %v1883_v5 = vpack.c.bf16 %v875_v63, %v875_v63  ;;  %v634_v6 = vadd.f32 %v1959_v2, %v2358_v38  ;;  %v762_v7 = vadd.f32 %v1991_v3, %v2358_v38 }
  0xf7   : > { %1193 = vst.msk [vmem:[%s2366_s8 + $0xa0] sm:$0xf] %vm1152_vm3, %v1880_v61  ;;  %v841_v8 = vmax.f32 %v613_v0, 0.0  ;;  %v873_v9 = vmax.f32 %v741_v1, 0.0  ;;  %v625_v10 = vpop.f32.mrf.mxu0  ;;  %v753_v11 = vpop.f32.mrf.mxu1 }
  0xf8   : > { %1164 = vst.msk [vmem:[%s2366_s8 + $0x2c] sm:$0xf] %vm1152_vm3, %v1851_v4  ;;  %1196 = vst.msk [vmem:[%s2366_s8 + $0xac] sm:$0xf] %vm1152_vm3, %v1883_v5  ;;  %v846_v12 = vmax.f32 %v634_v6, 0.0  ;;  %v878_v13 = vmax.f32 %v762_v7, 0.0  ;;  %v626_v14 = vadd.f32 %v2358_v38, %v625_v10  ;;  %v754_v15 = vadd.f32 %v2358_v38, %v753_v11 }
  0xf9   : > { %v1849_v16 = vpack.c.bf16 %v841_v8, %v841_v8  ;;  %v1881_v17 = vpack.c.bf16 %v873_v9, %v873_v9  ;;  %v1960_v18 = vpop.f32.mrf.mxu0  ;;  %v1992_v19 = vpop.f32.mrf.mxu1 }
  0xfa   : > { %v1854_v20 = vpack.c.bf16 %v846_v12, %v846_v12  ;;  %v1886_v21 = vpack.c.bf16 %v878_v13, %v878_v13  ;;  %v844_v22 = vmax.f32 %v626_v14, 0.0  ;;  %v876_v23 = vmax.f32 %v754_v15, 0.0 }
  0xfb   : > { %1162 = vst.msk [vmem:[%s2366_s8 + $0x24] sm:$0xf] %vm1152_vm3, %v1849_v16  ;;  %1194 = vst.msk [vmem:[%s2366_s8 + $0xa4] sm:$0xf] %vm1152_vm3, %v1881_v17  ;;  %v637_v24 = vadd.f32 %v1960_v18, %v2358_v38  ;;  %v765_v25 = vadd.f32 %v1992_v19, %v2358_v38  ;;  %v628_v26 = vpop.f32.mrf.mxu0  ;;  %v756_v27 = vpop.f32.mrf.mxu1 }
  0xfc   : > { %1167 = vst.msk [vmem:[%s2366_s8 + $0x38] sm:$0xf] %vm1152_vm3, %v1854_v20  ;;  %1199 = vst.msk [vmem:[%s2366_s8 + $0xb8] sm:$0xf] %vm1152_vm3, %v1886_v21  ;;  %v1852_v28 = vpack.c.bf16 %v844_v22, %v844_v22  ;;  %v1884_v29 = vpack.c.bf16 %v876_v23, %v876_v23  ;;  %v629_v30 = vadd.f32 %v2358_v38, %v628_v26 }
  0xfd   : > { %v757_v31 = vadd.f32 %v2358_v38, %v756_v27  ;;  %v847_v32 = vmax.f32 %v637_v24, 0.0  ;;  %v879_v33 = vmax.f32 %v765_v25, 0.0  ;;  %v1963_v34 = vpop.f32.mrf.mxu0  ;;  %v1995_v35 = vpop.f32.mrf.mxu1 }
  0xfe   : > { %1165 = vst.msk [vmem:[%s2366_s8 + $0x30] sm:$0xf] %vm1152_vm3, %v1852_v28  ;;  %1197 = vst.msk [vmem:[%s2366_s8 + $0xb0] sm:$0xf] %vm1152_vm3, %v1884_v29  ;;  %v845_v36 = vmax.f32 %v629_v30, 0.0  ;;  %v650_v39 = vadd.f32 %v1963_v34, %v2358_v38  ;;  %v778_v40 = vadd.f32 %v1995_v35, %v2358_v38 }
  0xff   : > { %v877_v37 = vmax.f32 %v757_v31, 0.0  ;;  %v1855_v41 = vpack.c.bf16 %v847_v32, %v847_v32  ;;  %v1887_v42 = vpack.c.bf16 %v879_v33, %v879_v33  ;;  %v641_v43 = vpop.f32.mrf.mxu0  ;;  %v769_v44 = vpop.f32.mrf.mxu1 }
 0x100   : > { %v1853_v45 = vpack.c.bf16 %v845_v36, %v845_v36  ;;  %v850_v47 = vmax.f32 %v650_v39, 0.0  ;;  %v882_v48 = vmax.f32 %v778_v40, 0.0  ;;  %v642_v49 = vadd.f32 %v2358_v38, %v641_v43 }
 0x101   : > { %v1885_v46 = vpack.c.bf16 %v877_v37, %v877_v37  ;;  %1168 = vst.msk [vmem:[%s2366_s8 + $0x3c] sm:$0xf] %vm1152_vm3, %v1855_v41  ;;  %1200 = vst.msk [vmem:[%s2366_s8 + $0xbc] sm:$0xf] %vm1152_vm3, %v1887_v42  ;;  %v770_v50 = vadd.f32 %v2358_v38, %v769_v44  ;;  %v1964_v51 = vpop.f32.mrf.mxu0  ;;  %v1996_v52 = vpop.f32.mrf.mxu1 }
 0x102   : > { %1166 = vst.msk [vmem:[%s2366_s8 + $0x34] sm:$0xf] %vm1152_vm3, %v1853_v45  ;;  %v1858_v53 = vpack.c.bf16 %v850_v47, %v850_v47  ;;  %v1890_v54 = vpack.c.bf16 %v882_v48, %v882_v48  ;;  %v653_v55 = vadd.f32 %v1964_v51, %v2358_v38  ;;  %v781_v56 = vadd.f32 %v1996_v52, %v2358_v38 }
 0x103   : > { %1198 = vst.msk [vmem:[%s2366_s8 + $0xb4] sm:$0xf] %vm1152_vm3, %v1885_v46  ;;  %v848_v57 = vmax.f32 %v642_v49, 0.0  ;;  %v880_v58 = vmax.f32 %v770_v50, 0.0  ;;  %v644_v59 = vpop.f32.mrf.mxu0  ;;  %v772_v60 = vpop.f32.mrf.mxu1 }
 0x104   : > { %1171 = vst.msk [vmem:[%s2366_s8 + $0x48] sm:$0xf] %vm1152_vm3, %v1858_v53  ;;  %1203 = vst.msk [vmem:[%s2366_s8 + $0xc8] sm:$0xf] %vm1152_vm3, %v1890_v54  ;;  %v851_v61 = vmax.f32 %v653_v55, 0.0  ;;  %v883_v62 = vmax.f32 %v781_v56, 0.0  ;;  %v645_v63 = vadd.f32 %v2358_v38, %v644_v59  ;;  %v773_v0 = vadd.f32 %v2358_v38, %v772_v60 }
 0x105   : > { %v1856_v1 = vpack.c.bf16 %v848_v57, %v848_v57  ;;  %v1888_v2 = vpack.c.bf16 %v880_v58, %v880_v58  ;;  %v1967_v3 = vpop.f32.mrf.mxu0  ;;  %v1999_v4 = vpop.f32.mrf.mxu1 }
 0x106   : > { %v1859_v5 = vpack.c.bf16 %v851_v61, %v851_v61  ;;  %v1891_v6 = vpack.c.bf16 %v883_v62, %v883_v62  ;;  %v849_v7 = vmax.f32 %v645_v63, 0.0  ;;  %v881_v8 = vmax.f32 %v773_v0, 0.0 }
 0x107   : > { %1169 = vst.msk [vmem:[%s2366_s8 + $0x40] sm:$0xf] %vm1152_vm3, %v1856_v1  ;;  %1201 = vst.msk [vmem:[%s2366_s8 + $0xc0] sm:$0xf] %vm1152_vm3, %v1888_v2  ;;  %v666_v9 = vadd.f32 %v1967_v3, %v2358_v38  ;;  %v794_v10 = vadd.f32 %v1999_v4, %v2358_v38  ;;  %v657_v11 = vpop.f32.mrf.mxu0  ;;  %v785_v12 = vpop.f32.mrf.mxu1 }
 0x108   : > { %1172 = vst.msk [vmem:[%s2366_s8 + $0x4c] sm:$0xf] %vm1152_vm3, %v1859_v5  ;;  %1204 = vst.msk [vmem:[%s2366_s8 + $0xcc] sm:$0xf] %vm1152_vm3, %v1891_v6  ;;  %v1857_v13 = vpack.c.bf16 %v849_v7, %v849_v7  ;;  %v1889_v14 = vpack.c.bf16 %v881_v8, %v881_v8  ;;  %v658_v15 = vadd.f32 %v2358_v38, %v657_v11 }
 0x109   : > { %v786_v16 = vadd.f32 %v2358_v38, %v785_v12  ;;  %v854_v17 = vmax.f32 %v666_v9, 0.0  ;;  %v886_v18 = vmax.f32 %v794_v10, 0.0  ;;  %v1968_v19 = vpop.f32.mrf.mxu0  ;;  %v2000_v20 = vpop.f32.mrf.mxu1 }
 0x10a   : > { %1170 = vst.msk [vmem:[%s2366_s8 + $0x44] sm:$0xf] %vm1152_vm3, %v1857_v13  ;;  %1202 = vst.msk [vmem:[%s2366_s8 + $0xc4] sm:$0xf] %vm1152_vm3, %v1889_v14  ;;  %v852_v21 = vmax.f32 %v658_v15, 0.0  ;;  %v669_v23 = vadd.f32 %v1968_v19, %v2358_v38  ;;  %v797_v24 = vadd.f32 %v2000_v20, %v2358_v38 }
 0x10b   : > { %v884_v22 = vmax.f32 %v786_v16, 0.0  ;;  %v1862_v25 = vpack.c.bf16 %v854_v17, %v854_v17  ;;  %v1894_v26 = vpack.c.bf16 %v886_v18, %v886_v18  ;;  %v660_v27 = vpop.f32.mrf.mxu0  ;;  %v788_v28 = vpop.f32.mrf.mxu1 }
 0x10c   : > { %v1860_v29 = vpack.c.bf16 %v852_v21, %v852_v21  ;;  %v855_v31 = vmax.f32 %v669_v23, 0.0  ;;  %v887_v32 = vmax.f32 %v797_v24, 0.0  ;;  %v661_v33 = vadd.f32 %v2358_v38, %v660_v27 }
 0x10d   : > { %v1892_v30 = vpack.c.bf16 %v884_v22, %v884_v22  ;;  %1175 = vst.msk [vmem:[%s2366_s8 + $0x58] sm:$0xf] %vm1152_vm3, %v1862_v25  ;;  %1207 = vst.msk [vmem:[%s2366_s8 + $0xd8] sm:$0xf] %vm1152_vm3, %v1894_v26  ;;  %v789_v34 = vadd.f32 %v2358_v38, %v788_v28  ;;  %v1971_v35 = vpop.f32.mrf.mxu0  ;;  %v2003_v36 = vpop.f32.mrf.mxu1 }
 0x10e   : > { %1173 = vst.msk [vmem:[%s2366_s8 + $0x50] sm:$0xf] %vm1152_vm3, %v1860_v29  ;;  %v1863_v37 = vpack.c.bf16 %v855_v31, %v855_v31  ;;  %v1895_v39 = vpack.c.bf16 %v887_v32, %v887_v32  ;;  %v682_v40 = vadd.f32 %v1971_v35, %v2358_v38  ;;  %v810_v41 = vadd.f32 %v2003_v36, %v2358_v38 }
 0x10f   : > { %1205 = vst.msk [vmem:[%s2366_s8 + $0xd0] sm:$0xf] %vm1152_vm3, %v1892_v30  ;;  %v853_v42 = vmax.f32 %v661_v33, 0.0  ;;  %v885_v43 = vmax.f32 %v789_v34, 0.0  ;;  %v673_v44 = vpop.f32.mrf.mxu0  ;;  %v801_v45 = vpop.f32.mrf.mxu1 }
 0x110   : > { %1176 = vst.msk [vmem:[%s2366_s8 + $0x5c] sm:$0xf] %vm1152_vm3, %v1863_v37  ;;  %1208 = vst.msk [vmem:[%s2366_s8 + $0xdc] sm:$0xf] %vm1152_vm3, %v1895_v39  ;;  %v858_v46 = vmax.f32 %v682_v40, 0.0  ;;  %v890_v47 = vmax.f32 %v810_v41, 0.0  ;;  %v674_v48 = vadd.f32 %v2358_v38, %v673_v44  ;;  %v802_v49 = vadd.f32 %v2358_v38, %v801_v45 }
 0x111   : > { %v1861_v50 = vpack.c.bf16 %v853_v42, %v853_v42  ;;  %v1893_v51 = vpack.c.bf16 %v885_v43, %v885_v43  ;;  %v1972_v52 = vpop.f32.mrf.mxu0  ;;  %v2004_v53 = vpop.f32.mrf.mxu1 }
 0x112   : > { %v1866_v54 = vpack.c.bf16 %v858_v46, %v858_v46  ;;  %v1898_v55 = vpack.c.bf16 %v890_v47, %v890_v47  ;;  %v856_v56 = vmax.f32 %v674_v48, 0.0  ;;  %v888_v57 = vmax.f32 %v802_v49, 0.0 }
 0x113   : > { %1174 = vst.msk [vmem:[%s2366_s8 + $0x54] sm:$0xf] %vm1152_vm3, %v1861_v50  ;;  %1206 = vst.msk [vmem:[%s2366_s8 + $0xd4] sm:$0xf] %vm1152_vm3, %v1893_v51  ;;  %v685_v58 = vadd.f32 %v1972_v52, %v2358_v38  ;;  %v813_v59 = vadd.f32 %v2004_v53, %v2358_v38  ;;  %v676_v60 = vpop.f32.mrf.mxu0  ;;  %v804_v61 = vpop.f32.mrf.mxu1 }
 0x114   : > { %1179 = vst.msk [vmem:[%s2366_s8 + $0x68] sm:$0xf] %vm1152_vm3, %v1866_v54  ;;  %1211 = vst.msk [vmem:[%s2366_s8 + $0xe8] sm:$0xf] %vm1152_vm3, %v1898_v55  ;;  %v1864_v62 = vpack.c.bf16 %v856_v56, %v856_v56  ;;  %v1896_v63 = vpack.c.bf16 %v888_v57, %v888_v57  ;;  %v677_v0 = vadd.f32 %v2358_v38, %v676_v60 }
 0x115   : > { %v805_v1 = vadd.f32 %v2358_v38, %v804_v61  ;;  %v859_v2 = vmax.f32 %v685_v58, 0.0  ;;  %v891_v3 = vmax.f32 %v813_v59, 0.0  ;;  %v1975_v4 = vpop.f32.mrf.mxu0  ;;  %v2007_v5 = vpop.f32.mrf.mxu1 }
 0x116   : > { %1177 = vst.msk [vmem:[%s2366_s8 + $0x60] sm:$0xf] %vm1152_vm3, %v1864_v62  ;;  %1209 = vst.msk [vmem:[%s2366_s8 + $0xe0] sm:$0xf] %vm1152_vm3, %v1896_v63  ;;  %v857_v6 = vmax.f32 %v677_v0, 0.0  ;;  %v698_v8 = vadd.f32 %v1975_v4, %v2358_v38  ;;  %v826_v9 = vadd.f32 %v2007_v5, %v2358_v38 }
 0x117   : > { %v889_v7 = vmax.f32 %v805_v1, 0.0  ;;  %v1867_v10 = vpack.c.bf16 %v859_v2, %v859_v2  ;;  %v1899_v11 = vpack.c.bf16 %v891_v3, %v891_v3  ;;  %v689_v12 = vpop.f32.mrf.mxu0  ;;  %v817_v13 = vpop.f32.mrf.mxu1 }
 0x118   : > { %v1865_v14 = vpack.c.bf16 %v857_v6, %v857_v6  ;;  %v862_v16 = vmax.f32 %v698_v8, 0.0  ;;  %v894_v17 = vmax.f32 %v826_v9, 0.0  ;;  %v690_v18 = vadd.f32 %v2358_v38, %v689_v12 }
 0x119   : > { %v1897_v15 = vpack.c.bf16 %v889_v7, %v889_v7  ;;  %1180 = vst.msk [vmem:[%s2366_s8 + $0x6c] sm:$0xf] %vm1152_vm3, %v1867_v10  ;;  %1212 = vst.msk [vmem:[%s2366_s8 + $0xec] sm:$0xf] %vm1152_vm3, %v1899_v11  ;;  %v818_v19 = vadd.f32 %v2358_v38, %v817_v13  ;;  %v1976_v20 = vpop.f32.mrf.mxu0  ;;  %v2008_v21 = vpop.f32.mrf.mxu1 }
 0x11a   : > { %1178 = vst.msk [vmem:[%s2366_s8 + $0x64] sm:$0xf] %vm1152_vm3, %v1865_v14  ;;  %v1870_v22 = vpack.c.bf16 %v862_v16, %v862_v16  ;;  %v1902_v23 = vpack.c.bf16 %v894_v17, %v894_v17  ;;  %v701_v24 = vadd.f32 %v1976_v20, %v2358_v38  ;;  %v829_v25 = vadd.f32 %v2008_v21, %v2358_v38 }
 0x11b   : > { %1210 = vst.msk [vmem:[%s2366_s8 + $0xe4] sm:$0xf] %vm1152_vm3, %v1897_v15  ;;  %v860_v26 = vmax.f32 %v690_v18, 0.0  ;;  %v892_v27 = vmax.f32 %v818_v19, 0.0  ;;  %v692_v28 = vpop.f32.mrf.mxu0  ;;  %v820_v29 = vpop.f32.mrf.mxu1 }
 0x11c   : > { %1183 = vst.msk [vmem:[%s2366_s8 + $0x78] sm:$0xf] %vm1152_vm3, %v1870_v22  ;;  %1215 = vst.msk [vmem:[%s2366_s8 + $0xf8] sm:$0xf] %vm1152_vm3, %v1902_v23  ;;  %v863_v30 = vmax.f32 %v701_v24, 0.0  ;;  %v895_v31 = vmax.f32 %v829_v25, 0.0  ;;  %v693_v32 = vadd.f32 %v2358_v38, %v692_v28  ;;  %v821_v33 = vadd.f32 %v2358_v38, %v820_v29 }
 0x11d   : > { %v1868_v34 = vpack.c.bf16 %v860_v26, %v860_v26  ;;  %v1900_v35 = vpack.c.bf16 %v892_v27, %v892_v27 }
 0x11e   : > { %v1871_v36 = vpack.c.bf16 %v863_v30, %v863_v30  ;;  %v1903_v37 = vpack.c.bf16 %v895_v31, %v895_v31  ;;  %v861_v39 = vmax.f32 %v693_v32, 0.0  ;;  %v893_v40 = vmax.f32 %v821_v33, 0.0  ;;  %1223 = sbr.rel (!%p2270_p4) target bundleno = 372 (0x174), region = 36 }
 0x11f   : > { %1181 = vst.msk [vmem:[%s2366_s8 + $0x70] sm:$0xf] %vm1152_vm3, %v1868_v34  ;;  %1213 = vst.msk [vmem:[%s2366_s8 + $0xf0] sm:$0xf] %vm1152_vm3, %v1900_v35 }
 0x120   : > { %1184 = vst.msk [vmem:[%s2366_s8 + $0x7c] sm:$0xf] %vm1152_vm3, %v1871_v36  ;;  %1216 = vst.msk [vmem:[%s2366_s8 + $0xfc] sm:$0xf] %vm1152_vm3, %v1903_v37  ;;  %v1869_v41 = vpack.c.bf16 %v861_v39, %v861_v39  ;;  %v1901_v42 = vpack.c.bf16 %v893_v40, %v893_v40 }
 0x122   : > { %1182 = vst.msk [vmem:[%s2366_s8 + $0x74] sm:$0xf] %vm1152_vm3, %v1869_v41  ;;  %1214 = vst.msk [vmem:[%s2366_s8 + $0xf4] sm:$0xf] %vm1152_vm3, %v1901_v42 }
 0x123   : > { %s2765_s9 = smov (!%p1226_p8, %s1225_s9), 64 }
 0x124   : > { %s1825_s17 = sshll.u32 %s2765_s9, 6 }
 0x125   : > { %p1828_p9 = scmp.eq.s32.totalorder %s1825_s17, 0 }
 0x126   : > { %s2567_s18 = sshrl.u32 (!%p1828_p9), %s2765_s9, 6 }
 0x127   : > { %1234 = sbr.rel (%p1828_p9) target bundleno = 372 (0x174), region = 40  ;;  %p1829_p10 = scmp.le.s32.totalorder (!%p1828_p9), %s2567_s18, 0 }
 0x12c   : > { %1641 = sbr.rel (%p1829_p10) target bundleno = 355 (0x163), region = 112  ;;  %s2758_s15 = smov (!%p1829_p10), %s2561_s14 }
 0x12d   : > { %s2759_s20 = smov (!%p1829_p10), %s2366_s8  ;;  %s2576_s21 = smov (!%p1829_p10), 0  }
 0x12e   : > { %s2578_s22 = smov (!%p1829_p10), 0  }
 0x131 LB: >> { %v1251_v38 = vld [vmem:[%s2198_s20] sm:$0xf]  ;;  %v1253_v43 = vld [vmem:[%s2198_s20 + $0x4] sm:$0xf]  ;;  %v1255_v44 = vld [vmem:[%s2198_s20 + $0x8] sm:$0xf]  ;;  %s2206_s22 = sphi %s2578_s22, %s1245_s22   ;;  %s2202_s21 = sphi %s2576_s21, %s2760_s21   ;;  %s2198_s20 = sphi %s2759_s20, %s1384_s20   ;;  %s2194_s15 = sphi %s2758_s15, %s1385_s15  }
 0x132   : >> { %1252 = vst [vmem:[%s2194_s15] sm:$0xf] %v1251_v38  ;;  %1254 = vst [vmem:[%s2194_s15 + $0x4] sm:$0xf] %v1253_v43  ;;  %v1257_v45 = vld [vmem:[%s2198_s20 + $0xc] sm:$0xf]  ;;  %s1379_s23 = sadd.s32 1, %s2202_s21 }
 0x133   : >> { %1256 = vst [vmem:[%s2194_s15 + $0x8] sm:$0xf] %v1255_v44  ;;  %v1259_v46 = vld [vmem:[%s2198_s20 + $0x10] sm:$0xf]  ;;  %v1261_v47 = vld [vmem:[%s2198_s20 + $0x14] sm:$0xf]  ;;  %p1380_p11 = scmp.ge.s32.totalorder %s1379_s23, %s2567_s18 }
 0x134   : >> { %1258 = vst [vmem:[%s2194_s15 + $0xc] sm:$0xf] %v1257_v45  ;;  %1260 = vst [vmem:[%s2194_s15 + $0x10] sm:$0xf] %v1259_v46  ;;  %v1263_v48 = vld [vmem:[%s2198_s20 + $0x18] sm:$0xf] }
 0x135   : >> { %1262 = vst [vmem:[%s2194_s15 + $0x14] sm:$0xf] %v1261_v47  ;;  %v1265_v49 = vld [vmem:[%s2198_s20 + $0x1c] sm:$0xf]  ;;  %v1267_v50 = vld [vmem:[%s2198_s20 + $0x20] sm:$0xf] }
 0x136   : >> { %1264 = vst [vmem:[%s2194_s15 + $0x18] sm:$0xf] %v1263_v48  ;;  %1266 = vst [vmem:[%s2194_s15 + $0x1c] sm:$0xf] %v1265_v49  ;;  %v1269_v51 = vld [vmem:[%s2198_s20 + $0x24] sm:$0xf] }
 0x137   : >> { %1268 = vst [vmem:[%s2194_s15 + $0x20] sm:$0xf] %v1267_v50  ;;  %v1271_v52 = vld [vmem:[%s2198_s20 + $0x28] sm:$0xf]  ;;  %v1273_v53 = vld [vmem:[%s2198_s20 + $0x2c] sm:$0xf] }
 0x138   : >> { %1270 = vst [vmem:[%s2194_s15 + $0x24] sm:$0xf] %v1269_v51  ;;  %1272 = vst [vmem:[%s2194_s15 + $0x28] sm:$0xf] %v1271_v52  ;;  %v1275_v54 = vld [vmem:[%s2198_s20 + $0x30] sm:$0xf] }
 0x139   : >> { %1274 = vst [vmem:[%s2194_s15 + $0x2c] sm:$0xf] %v1273_v53  ;;  %v1277_v55 = vld [vmem:[%s2198_s20 + $0x34] sm:$0xf]  ;;  %v1279_v56 = vld [vmem:[%s2198_s20 + $0x38] sm:$0xf] }
 0x13a   : >> { %1276 = vst [vmem:[%s2194_s15 + $0x30] sm:$0xf] %v1275_v54  ;;  %1278 = vst [vmem:[%s2194_s15 + $0x34] sm:$0xf] %v1277_v55  ;;  %v1281_v57 = vld [vmem:[%s2198_s20 + $0x3c] sm:$0xf] }
 0x13b   : >> { %1280 = vst [vmem:[%s2194_s15 + $0x38] sm:$0xf] %v1279_v56  ;;  %v1283_v58 = vld [vmem:[%s2198_s20 + $0x40] sm:$0xf]  ;;  %v1285_v59 = vld [vmem:[%s2198_s20 + $0x44] sm:$0xf] }
 0x13c   : >> { %1282 = vst [vmem:[%s2194_s15 + $0x3c] sm:$0xf] %v1281_v57  ;;  %1284 = vst [vmem:[%s2194_s15 + $0x40] sm:$0xf] %v1283_v58  ;;  %v1287_v60 = vld [vmem:[%s2198_s20 + $0x48] sm:$0xf] }
 0x13d   : >> { %1286 = vst [vmem:[%s2194_s15 + $0x44] sm:$0xf] %v1285_v59  ;;  %v1289_v61 = vld [vmem:[%s2198_s20 + $0x4c] sm:$0xf]  ;;  %v1291_v62 = vld [vmem:[%s2198_s20 + $0x50] sm:$0xf] }
 0x13e   : >> { %1288 = vst [vmem:[%s2194_s15 + $0x48] sm:$0xf] %v1287_v60  ;;  %1290 = vst [vmem:[%s2194_s15 + $0x4c] sm:$0xf] %v1289_v61  ;;  %v1293_v63 = vld [vmem:[%s2198_s20 + $0x54] sm:$0xf] }
 0x13f   : >> { %1292 = vst [vmem:[%s2194_s15 + $0x50] sm:$0xf] %v1291_v62  ;;  %v1295_v0 = vld [vmem:[%s2198_s20 + $0x58] sm:$0xf]  ;;  %v1297_v1 = vld [vmem:[%s2198_s20 + $0x5c] sm:$0xf] }
 0x140   : >> { %1294 = vst [vmem:[%s2194_s15 + $0x54] sm:$0xf] %v1293_v63  ;;  %1296 = vst [vmem:[%s2194_s15 + $0x58] sm:$0xf] %v1295_v0  ;;  %v1299_v2 = vld [vmem:[%s2198_s20 + $0x60] sm:$0xf] }
 0x141   : >> { %1298 = vst [vmem:[%s2194_s15 + $0x5c] sm:$0xf] %v1297_v1  ;;  %v1301_v3 = vld [vmem:[%s2198_s20 + $0x64] sm:$0xf]  ;;  %v1303_v4 = vld [vmem:[%s2198_s20 + $0x68] sm:$0xf] }
 0x142   : >> { %1300 = vst [vmem:[%s2194_s15 + $0x60] sm:$0xf] %v1299_v2  ;;  %1302 = vst [vmem:[%s2194_s15 + $0x64] sm:$0xf] %v1301_v3  ;;  %v1305_v5 = vld [vmem:[%s2198_s20 + $0x6c] sm:$0xf] }
 0x143   : >> { %1304 = vst [vmem:[%s2194_s15 + $0x68] sm:$0xf] %v1303_v4  ;;  %v1307_v6 = vld [vmem:[%s2198_s20 + $0x70] sm:$0xf]  ;;  %v1309_v7 = vld [vmem:[%s2198_s20 + $0x74] sm:$0xf] }
 0x144   : >> { %1306 = vst [vmem:[%s2194_s15 + $0x6c] sm:$0xf] %v1305_v5  ;;  %1308 = vst [vmem:[%s2194_s15 + $0x70] sm:$0xf] %v1307_v6  ;;  %v1311_v8 = vld [vmem:[%s2198_s20 + $0x78] sm:$0xf] }
 0x145   : >> { %1310 = vst [vmem:[%s2194_s15 + $0x74] sm:$0xf] %v1309_v7  ;;  %v1313_v9 = vld [vmem:[%s2198_s20 + $0x7c] sm:$0xf]  ;;  %v1315_v10 = vld [vmem:[%s2198_s20 + $0x80] sm:$0xf] }
 0x146   : >> { %1312 = vst [vmem:[%s2194_s15 + $0x78] sm:$0xf] %v1311_v8  ;;  %1314 = vst [vmem:[%s2194_s15 + $0x7c] sm:$0xf] %v1313_v9  ;;  %v1317_v11 = vld [vmem:[%s2198_s20 + $0x84] sm:$0xf] }
 0x147   : >> { %1316 = vst [vmem:[%s2194_s15 + $0x80] sm:$0xf] %v1315_v10  ;;  %v1319_v12 = vld [vmem:[%s2198_s20 + $0x88] sm:$0xf]  ;;  %v1321_v13 = vld [vmem:[%s2198_s20 + $0x8c] sm:$0xf] }
 0x148   : >> { %1318 = vst [vmem:[%s2194_s15 + $0x84] sm:$0xf] %v1317_v11  ;;  %1320 = vst [vmem:[%s2194_s15 + $0x88] sm:$0xf] %v1319_v12  ;;  %v1323_v14 = vld [vmem:[%s2198_s20 + $0x90] sm:$0xf] }
 0x149   : >> { %1322 = vst [vmem:[%s2194_s15 + $0x8c] sm:$0xf] %v1321_v13  ;;  %v1325_v15 = vld [vmem:[%s2198_s20 + $0x94] sm:$0xf]  ;;  %v1327_v16 = vld [vmem:[%s2198_s20 + $0x98] sm:$0xf] }
 0x14a   : >> { %1324 = vst [vmem:[%s2194_s15 + $0x90] sm:$0xf] %v1323_v14  ;;  %1326 = vst [vmem:[%s2194_s15 + $0x94] sm:$0xf] %v1325_v15  ;;  %v1329_v17 = vld [vmem:[%s2198_s20 + $0x9c] sm:$0xf] }
 0x14b   : >> { %1328 = vst [vmem:[%s2194_s15 + $0x98] sm:$0xf] %v1327_v16  ;;  %v1331_v18 = vld [vmem:[%s2198_s20 + $0xa0] sm:$0xf]  ;;  %v1333_v19 = vld [vmem:[%s2198_s20 + $0xa4] sm:$0xf] }
 0x14c   : >> { %1330 = vst [vmem:[%s2194_s15 + $0x9c] sm:$0xf] %v1329_v17  ;;  %1332 = vst [vmem:[%s2194_s15 + $0xa0] sm:$0xf] %v1331_v18  ;;  %v1335_v20 = vld [vmem:[%s2198_s20 + $0xa8] sm:$0xf] }
 0x14d   : >> { %1334 = vst [vmem:[%s2194_s15 + $0xa4] sm:$0xf] %v1333_v19  ;;  %v1337_v21 = vld [vmem:[%s2198_s20 + $0xac] sm:$0xf]  ;;  %v1339_v22 = vld [vmem:[%s2198_s20 + $0xb0] sm:$0xf] }
 0x14e   : >> { %1336 = vst [vmem:[%s2194_s15 + $0xa8] sm:$0xf] %v1335_v20  ;;  %1338 = vst [vmem:[%s2194_s15 + $0xac] sm:$0xf] %v1337_v21  ;;  %v1341_v23 = vld [vmem:[%s2198_s20 + $0xb4] sm:$0xf] }
 0x14f   : >> { %1340 = vst [vmem:[%s2194_s15 + $0xb0] sm:$0xf] %v1339_v22  ;;  %v1343_v24 = vld [vmem:[%s2198_s20 + $0xb8] sm:$0xf]  ;;  %v1345_v25 = vld [vmem:[%s2198_s20 + $0xbc] sm:$0xf] }
 0x150   : >> { %1342 = vst [vmem:[%s2194_s15 + $0xb4] sm:$0xf] %v1341_v23  ;;  %1344 = vst [vmem:[%s2194_s15 + $0xb8] sm:$0xf] %v1343_v24  ;;  %v1347_v26 = vld [vmem:[%s2198_s20 + $0xc0] sm:$0xf] }
 0x151   : >> { %1346 = vst [vmem:[%s2194_s15 + $0xbc] sm:$0xf] %v1345_v25  ;;  %v1349_v27 = vld [vmem:[%s2198_s20 + $0xc4] sm:$0xf]  ;;  %v1351_v28 = vld [vmem:[%s2198_s20 + $0xc8] sm:$0xf] }
 0x152   : >> { %1348 = vst [vmem:[%s2194_s15 + $0xc0] sm:$0xf] %v1347_v26  ;;  %1350 = vst [vmem:[%s2194_s15 + $0xc4] sm:$0xf] %v1349_v27  ;;  %v1353_v29 = vld [vmem:[%s2198_s20 + $0xcc] sm:$0xf] }
 0x153   : >> { %1352 = vst [vmem:[%s2194_s15 + $0xc8] sm:$0xf] %v1351_v28  ;;  %v1355_v30 = vld [vmem:[%s2198_s20 + $0xd0] sm:$0xf]  ;;  %v1357_v31 = vld [vmem:[%s2198_s20 + $0xd4] sm:$0xf] }
 0x154   : >> { %1354 = vst [vmem:[%s2194_s15 + $0xcc] sm:$0xf] %v1353_v29  ;;  %1356 = vst [vmem:[%s2194_s15 + $0xd0] sm:$0xf] %v1355_v30  ;;  %v1359_v32 = vld [vmem:[%s2198_s20 + $0xd8] sm:$0xf] }
 0x155   : >> { %1358 = vst [vmem:[%s2194_s15 + $0xd4] sm:$0xf] %v1357_v31  ;;  %v1361_v33 = vld [vmem:[%s2198_s20 + $0xdc] sm:$0xf]  ;;  %v1363_v34 = vld [vmem:[%s2198_s20 + $0xe0] sm:$0xf] }
 0x156   : >> { %1360 = vst [vmem:[%s2194_s15 + $0xd8] sm:$0xf] %v1359_v32  ;;  %1362 = vst [vmem:[%s2194_s15 + $0xdc] sm:$0xf] %v1361_v33  ;;  %v1365_v35 = vld [vmem:[%s2198_s20 + $0xe4] sm:$0xf] }
 0x157   : >> { %1364 = vst [vmem:[%s2194_s15 + $0xe0] sm:$0xf] %v1363_v34  ;;  %v1367_v36 = vld [vmem:[%s2198_s20 + $0xe8] sm:$0xf]  ;;  %v1369_v37 = vld [vmem:[%s2198_s20 + $0xec] sm:$0xf] }
 0x158   : >> { %1366 = vst [vmem:[%s2194_s15 + $0xe4] sm:$0xf] %v1365_v35  ;;  %1368 = vst [vmem:[%s2194_s15 + $0xe8] sm:$0xf] %v1367_v36  ;;  %v1371_v39 = vld [vmem:[%s2198_s20 + $0xf0] sm:$0xf] }
 0x159   : >> { %1370 = vst [vmem:[%s2194_s15 + $0xec] sm:$0xf] %v1369_v37  ;;  %v1373_v40 = vld [vmem:[%s2198_s20 + $0xf4] sm:$0xf]  ;;  %v1375_v41 = vld [vmem:[%s2198_s20 + $0xf8] sm:$0xf] }
 0x15a   : >> { %1372 = vst [vmem:[%s2194_s15 + $0xf0] sm:$0xf] %v1371_v39  ;;  %1374 = vst [vmem:[%s2194_s15 + $0xf4] sm:$0xf] %v1373_v40  ;;  %v1377_v42 = vld [vmem:[%s2198_s20 + $0xfc] sm:$0xf] }
 0x15b   : >> { %1376 = vst [vmem:[%s2194_s15 + $0xf8] sm:$0xf] %v1375_v41  ;;  %1378 = vst [vmem:[%s2194_s15 + $0xfc] sm:$0xf] %v1377_v42  ;;  %s2767_s23 = smov (%p1380_p11, %s1379_s23), 0  ;;  %s1245_s22 = sadd.s32 1, %s2206_s22  }
 0x15c   : >> { %s1830_s24 = sshll.u32 %s2767_s23, 8  ;;  %p1244_p12 = scmp.ge.s32.totalorder %s1245_s22, %s2567_s18 }
 0x15d   : >> { %s1384_s20 = scalar_lea.vmem %s2366_s8, %s1830_s24 [#allocation2]   ;;  %s1385_s15 = scalar_lea.vmem %s2561_s14, %s1830_s24  }
 0x15e   : >> { %s2760_s21 = smov %s2767_s23  ;;  %1247 = sbr.rel (!%p1244_p12) target bundleno = 305 (0x131), region = 118 }
 0x163 PF: > { %s2735_s25 = sand.u32 63, %s2765_s9   ;;  %s1905_s26 = sshll.u32 %s2567_s18, 8 }
 0x164   : > { %s1390_s27 = scalar_lea.vmem %s2366_s8, %s1905_s26 [#allocation2]   ;;  %s1392_s28 = scalar_lea.vmem %s2561_s14, %s1905_s26  }
 0x165   : > { %p1835_p13 = scmp.le.s32.totalorder %s2735_s25, 0 }
 0x166   : > { %s2208_s29 = smov (!%p1835_p13), %s1392_s28   ;;  %s2212_s30 = smov (!%p1835_p13), %s1390_s27  }
 0x167   : > { %1655 = sbr.rel (%p1835_p13) target bundleno = 372 (0x174), region = 123  ;;  %s2216_s4 = smov (!%p1835_p13), 0  }
 0x168   : > { %s2220_s5 = smov (!%p1835_p13), 0  }
 0x16c LB: >> { %v1402_v38 = vld [vmem:[%s2214_s30] sm:$0xf]  ;;  %s1404_s6 = sadd.s32 1, %s2218_s4  ;;  %s1396_s5 = sadd.s32 1, %s2222_s5   ;;  %s2222_s5 = sphi %s2220_s5, %s1396_s5   ;;  %s2218_s4 = sphi %s2216_s4, %s2217_s4   ;;  %s2214_s30 = sphi %s2212_s30, %s1409_s30   ;;  %s2210_s29 = sphi %s2208_s29, %s1410_s29  }
 0x16d   : >> { %1403 = vst [vmem:[%s2210_s29] sm:$0xf] %v1402_v38  ;;  %p1405_p0 = scmp.ge.s32.totalorder %s1404_s6, %s2735_s25  ;;  %p1395_p1 = scmp.ge.s32.totalorder %s1396_s5, %s2735_s25 }
 0x16f   : >> { %s2769_s6 = smov (%p1405_p0, %s1404_s6), 0  ;;  %1398 = sbr.rel (!%p1395_p1) target bundleno = 364 (0x16c), region = 129 }
 0x170   : >> { %s1836_s7 = sshll.u32 %s2769_s6, 2  ;;  %s2217_s4 = smov %s2769_s6  }
 0x171   : >> { %s1409_s30 = scalar_lea.vmem %s1390_s27, %s1836_s7 [#allocation2]   ;;  %s1410_s29 = scalar_lea.vmem %s1392_s28, %s1836_s7  }
 0x174 PF: > { %p10_p2 = scmp.ge.s32.totalorder %s2260_s16, 89   ;;  %s2761_s12 = smov %s2186_s13 }
 0x175   : > { %s2762_s13 = smov %s2268_s19  ;;  %s2763_s14 = smov %s2260_s16 }
 0x176   :  { %12 = sbr.rel (!%p10_p2) target bundleno = 2 (0x2), region = 140 }

</bundles_post_ra>
